<compile_context>
chip_gen: v5e
topology: v5e:2x2
jax: 0.10.0
libtpu: 0.0.40
codegen_flags: <defaults>
</compile_context>

<pallas_src>
import functools

import jax
import jax.numpy as jnp
from jax.experimental import pallas as pl
from jax.experimental.pallas import tpu as pltpu


def _mlp_kernel(xT_ref, w_in_ref, b_in_ref, w1_ref, b1_ref, w2_ref, b2_ref,
                w_out_ref, b_out_ref, o_ref, *, compute_dtype):
    # xT: (in_dim, T)  weights: (out, in)  f32 biases: (out, 1)
    # w1/w2 arrive already cast to compute_dtype; b_out: (1,) scalar in SMEM.
    # output: (1, T) lane-dense f32.
    xT = xT_ref[...]
    w_in = w_in_ref[...]
    in_dim = xT_ref.shape[0]  # static (2)

    # fc_in (K = in_dim = 2): VPU outer-product FMAs, skip the MXU.
    h = b_in_ref[...]                                   # (H, 1) broadcasts over lanes
    for k in range(in_dim):                             # static, tiny trip count
        h = h + w_in[:, k:k + 1] * xT[k:k + 1, :]       # (H,1)*(1,T) -> (H,T)
    h = jnp.tanh(h.astype(compute_dtype))               # EUP (bf16 on v6e/v7x)

    # hidden layers: (H, H) @ (H, T) on the MXU with f32 accumulation; tanh in
    # compute_dtype so the EUP/VPU run bf16-wide on v6e/v7x.
    h = jnp.tanh((jnp.dot(w1_ref[...], h, preferred_element_type=jnp.float32)
                  + b1_ref[...]).astype(compute_dtype))
    h = jnp.tanh((jnp.dot(w2_ref[...], h, preferred_element_type=jnp.float32)
                  + b2_ref[...]).astype(compute_dtype))

    # fc_out (N = 1): broadcast-multiply + sublane reduce (VPU/XLU), skip the MXU.
    o_ref[...] = (jnp.sum(h.astype(jnp.float32) * w_out_ref[...],
                          axis=0, keepdims=True)
                  + b_out_ref[0])                       # (1, T) unmasked lane store


def _pick_batch_tile(B):
    # Large lane-dense tiles amortize the ~0.35us per-grid-step overhead, but
    # cap the tile at ~ceil(B/2) (rounded to a lane multiple) so the grid keeps
    # >= 2 steps and the "parallel" batch axis can shard across both v7x
    # TensorCores.  On single-TC parts (v5e/v6e) the extra step costs <1us.
    half = ((B + 1) // 2 + 127) // 128 * 128
    return int(min(4096, max(128, half)))


def fully_connected_network_T(xT, params, *, batch_tile=None,
                              compute_dtype=jnp.float32):
    """xT: (input_dim, B) float32, batch on the lane axis. Returns (B, 1) f32."""
    in_dim, B = xT.shape
    H = params["w_in"].shape[0]
    if batch_tile is None:
        batch_tile = _pick_batch_tile(B)

    n_tiles = pl.cdiv(B, batch_tile)
    B_pad = n_tiles * batch_tile
    if B_pad != B:
        # Cheap lane-axis pad only; no transpose / second HBM copy of x.
        xT = jnp.pad(xT, ((0, 0), (0, B_pad - B)))

    # Only the hidden-layer weights change dtype on the bf16 path (tiny arrays).
    w1 = params["w1"].astype(compute_dtype)
    w2 = params["w2"].astype(compute_dtype)

    fixed = lambda i: (0, 0)
    kernel = functools.partial(_mlp_kernel, compute_dtype=compute_dtype)

    out = pl.pallas_call(
        kernel,
        out_shape=jax.ShapeDtypeStruct((1, B_pad), jnp.float32),
        grid_spec=pltpu.PrefetchScalarGridSpec(
            num_scalar_prefetch=0,
            grid=(n_tiles,),
            in_specs=[
                pl.BlockSpec((in_dim, batch_tile), lambda i: (0, i)),   # x^T
                pl.BlockSpec((H, in_dim), fixed),                       # w_in
                pl.BlockSpec((H, 1), fixed),                            # b_in
                pl.BlockSpec((H, H), fixed),                            # w1
                pl.BlockSpec((H, 1), fixed),                            # b1
                pl.BlockSpec((H, H), fixed),                            # w2
                pl.BlockSpec((H, 1), fixed),                            # b2
                pl.BlockSpec((H, 1), fixed),                            # w_out
                pl.BlockSpec(memory_space=pltpu.MemorySpace.SMEM),      # b_out (1,)
            ],
            out_specs=pl.BlockSpec((1, batch_tile), lambda i: (0, i)),
        ),
        compiler_params=pltpu.CompilerParams(
            dimension_semantics=("parallel",),
        ),
    )(xT, params["w_in"], params["b_in"], w1, params["b1"],
      w2, params["b2"], params["w_out"], params["b_out"])

    return out[0, :B].reshape(B, 1)  # (1,B) -> (B,1) is a free reshape


def fully_connected_network(x, params, **kwargs):
    """Convenience wrapper for PyTorch-style (B, input_dim) inputs.
    Prefer fully_connected_network_T with data produced directly in
    (input_dim, B) layout to avoid the extra XLA transpose."""
    return fully_connected_network_T(x.T, params, **kwargs)


def init_params(key, hidden_size=20, input_dim=2):
    """Mirrors the PyTorch module: weights ~ N(0, 0.1); biases keep the default
    Linear init U(+-1/sqrt(fan_in)).  Weights stored as (out, in); biases as
    (out, 1) columns; w_out as an (H, 1) column; b_out as a 1-D (1,) scalar."""
    keys = jax.random.split(key, 8)
    H = hidden_size

    def w(k, fan_out, fan_in):
        return (0.1 * jax.random.normal(k, (fan_out, fan_in))).astype(jnp.float32)

    def b(k, fan_in, shape):
        bound = 1.0 / jnp.sqrt(float(fan_in))
        return jax.random.uniform(k, shape, minval=-bound,
                                  maxval=bound).astype(jnp.float32)

    return {
        "w_in": w(keys[0], H, input_dim),                         # (H, in)
        "b_in": b(keys[1], input_dim, (H, 1)),                    # (H, 1)
        "w1": w(keys[2], H, H),                                   # (H, H)
        "b1": b(keys[3], H, (H, 1)),                              # (H, 1)
        "w2": w(keys[4], H, H),                                   # (H, H)
        "b2": b(keys[5], H, (H, 1)),                              # (H, 1)
        "w_out": (0.1 * jax.random.normal(keys[6], (H, 1))
                  ).astype(jnp.float32),                          # (H, 1)
        "b_out": b(keys[7], H, (1,)),                             # (1,) SMEM scalar
    }


def _reference(x, p):
    h = jnp.tanh(x @ p["w_in"].T + p["b_in"].T)
    h = jnp.tanh(h @ p["w1"].T + p["b1"].T)
    h = jnp.tanh(h @ p["w2"].T + p["b2"].T)
    return h @ p["w_out"] + p["b_out"]


if __name__ == "__main__":
    key = jax.random.PRNGKey(0)
    k_x, k_p = jax.random.split(key)

    B, INPUT_DIM, HIDDEN = 512, 2, 20
    # Build the input directly in (in_dim, B) layout -- no XLA-side transpose
    # or extra HBM copy in front of the kernel.
    xT = jax.random.normal(k_x, (INPUT_DIM, B), dtype=jnp.float32)
    params = init_params(k_p, hidden_size=HIDDEN, input_dim=INPUT_DIM)

    ref = _reference(xT.T, params)

    # f32 path (correct + fast on every generation, incl. v5e).
    u_theta = jax.block_until_ready(fully_connected_network_T(xT, params))
    assert u_theta.shape == (B, 1)
    assert jnp.allclose(u_theta, ref, atol=1e-5, rtol=1e-5)

    # bf16 activation path (recommended on v6e/v7x; still correct elsewhere).
    u_bf16 = jax.block_until_ready(
        fully_connected_network_T(xT, params, compute_dtype=jnp.bfloat16))
    assert u_bf16.shape == (B, 1)
    assert jnp.allclose(u_bf16, ref, atol=5e-2, rtol=5e-2)

    print("KERNEL_OK")
</pallas_src>

<mosaic_0001>
module attributes {stable_mosaic.version = 11 : i64} {
  func.func @_mlp_kernel(%arg0: i32, %arg1: memref<2x256xf32, #tpu.memory_space<vmem>>, %arg2: memref<20x2xf32, #tpu.memory_space<vmem>>, %arg3: memref<20x1xf32, #tpu.memory_space<vmem>>, %arg4: memref<20x20xf32, #tpu.memory_space<vmem>>, %arg5: memref<20x1xf32, #tpu.memory_space<vmem>>, %arg6: memref<20x20xf32, #tpu.memory_space<vmem>>, %arg7: memref<20x1xf32, #tpu.memory_space<vmem>>, %arg8: memref<20x1xf32, #tpu.memory_space<vmem>>, %arg9: memref<1xf32, #tpu.memory_space<smem>>, %arg10: memref<1x256xf32, #tpu.memory_space<vmem>>) attributes {dimension_semantics = [#tpu.dimension_semantics<parallel>], iteration_bounds = array<i64: 2>, scalar_prefetch = 0 : i64, scratch_operands = 0 : i64, tpu.core_type = #tpu.core_type<tc>, window_params = [{transform_indices = @transform_0, window_bounds = array<i64: 2, 256>}, {pipeline_mode = #tpu.pipeline_mode<synchronous>, transform_indices = @transform_1, window_bounds = array<i64: 20, 2>}, {pipeline_mode = #tpu.pipeline_mode<synchronous>, transform_indices = @transform_2, window_bounds = array<i64: 20, 1>}, {pipeline_mode = #tpu.pipeline_mode<synchronous>, transform_indices = @transform_3, window_bounds = array<i64: 20, 20>}, {pipeline_mode = #tpu.pipeline_mode<synchronous>, transform_indices = @transform_4, window_bounds = array<i64: 20, 1>}, {pipeline_mode = #tpu.pipeline_mode<synchronous>, transform_indices = @transform_5, window_bounds = array<i64: 20, 20>}, {pipeline_mode = #tpu.pipeline_mode<synchronous>, transform_indices = @transform_6, window_bounds = array<i64: 20, 1>}, {pipeline_mode = #tpu.pipeline_mode<synchronous>, transform_indices = @transform_7, window_bounds = array<i64: 20, 1>}, {transform_indices = @transform_8, window_bounds = array<i64: 1>}, {transform_indices = @transform_9, window_bounds = array<i64: 1, 256>}]} {
    %c0 = arith.constant 0 : index
    %c0_0 = arith.constant 0 : index
    %0 = vector.load %arg1[%c0, %c0_0] : memref<2x256xf32, #tpu.memory_space<vmem>>, vector<2x256xf32>
    %c0_1 = arith.constant 0 : index
    %c0_2 = arith.constant 0 : index
    %1 = vector.load %arg2[%c0_1, %c0_2] : memref<20x2xf32, #tpu.memory_space<vmem>>, vector<20x2xf32>
    %c0_3 = arith.constant 0 : index
    %c0_4 = arith.constant 0 : index
    %2 = vector.load %arg3[%c0_3, %c0_4] : memref<20x1xf32, #tpu.memory_space<vmem>>, vector<20x1xf32>
    %3 = vector.extract_strided_slice %1 {offsets = [0, 0], sizes = [20, 1], strides = [1, 1]} : vector<20x2xf32> to vector<20x1xf32>
    %4 = vector.extract_strided_slice %0 {offsets = [0, 0], sizes = [1, 256], strides = [1, 1]} : vector<2x256xf32> to vector<1x256xf32>
    %5 = vector.broadcast %3 : vector<20x1xf32> to vector<20x256xf32>
    %6 = vector.broadcast %4 : vector<1x256xf32> to vector<20x256xf32>
    %7 = arith.mulf %5, %6 : vector<20x256xf32>
    %8 = vector.broadcast %2 : vector<20x1xf32> to vector<20x256xf32>
    %9 = arith.addf %8, %7 : vector<20x256xf32>
    %10 = vector.extract_strided_slice %1 {offsets = [0, 1], sizes = [20, 1], strides = [1, 1]} : vector<20x2xf32> to vector<20x1xf32>
    %11 = vector.extract_strided_slice %0 {offsets = [1, 0], sizes = [1, 256], strides = [1, 1]} : vector<2x256xf32> to vector<1x256xf32>
    %12 = vector.broadcast %10 : vector<20x1xf32> to vector<20x256xf32>
    %13 = vector.broadcast %11 : vector<1x256xf32> to vector<20x256xf32>
    %14 = arith.mulf %12, %13 : vector<20x256xf32>
    %15 = arith.addf %9, %14 : vector<20x256xf32>
    %16 = math.tanh %15 : vector<20x256xf32>
    %c0_5 = arith.constant 0 : index
    %c0_6 = arith.constant 0 : index
    %17 = vector.load %arg4[%c0_5, %c0_6] : memref<20x20xf32, #tpu.memory_space<vmem>>, vector<20x20xf32>
    %cst = arith.constant dense<0.000000e+00> : vector<20x256xf32>
    %18 = tpu.matmul %17, %16, %cst {dimension_numbers = #tpu.dot_dimension_numbers<[1], [0], [0], [1], [0, 0, 1, 1], [], []>} : vector<20x20xf32>, vector<20x256xf32>, vector<20x256xf32> -> vector<20x256xf32>
    %c0_7 = arith.constant 0 : index
    %c0_8 = arith.constant 0 : index
    %19 = vector.load %arg5[%c0_7, %c0_8] : memref<20x1xf32, #tpu.memory_space<vmem>>, vector<20x1xf32>
    %20 = vector.broadcast %19 : vector<20x1xf32> to vector<20x256xf32>
    %21 = arith.addf %18, %20 : vector<20x256xf32>
    %22 = math.tanh %21 : vector<20x256xf32>
    %c0_9 = arith.constant 0 : index
    %c0_10 = arith.constant 0 : index
    %23 = vector.load %arg6[%c0_9, %c0_10] : memref<20x20xf32, #tpu.memory_space<vmem>>, vector<20x20xf32>
    %cst_11 = arith.constant dense<0.000000e+00> : vector<20x256xf32>
    %24 = tpu.matmul %23, %22, %cst_11 {dimension_numbers = #tpu.dot_dimension_numbers<[1], [0], [0], [1], [0, 0, 1, 1], [], []>} : vector<20x20xf32>, vector<20x256xf32>, vector<20x256xf32> -> vector<20x256xf32>
    %c0_12 = arith.constant 0 : index
    %c0_13 = arith.constant 0 : index
    %25 = vector.load %arg7[%c0_12, %c0_13] : memref<20x1xf32, #tpu.memory_space<vmem>>, vector<20x1xf32>
    %26 = vector.broadcast %25 : vector<20x1xf32> to vector<20x256xf32>
    %27 = arith.addf %24, %26 : vector<20x256xf32>
    %28 = math.tanh %27 : vector<20x256xf32>
    %c0_14 = arith.constant 0 : index
    %c0_15 = arith.constant 0 : index
    %29 = vector.load %arg8[%c0_14, %c0_15] : memref<20x1xf32, #tpu.memory_space<vmem>>, vector<20x1xf32>
    %30 = vector.broadcast %29 : vector<20x1xf32> to vector<20x256xf32>
    %31 = arith.mulf %28, %30 : vector<20x256xf32>
    %cst_16 = arith.constant dense<0.000000e+00> : vector<256xf32>
    %32 = vector.multi_reduction <add>, %31, %cst_16 [0] : vector<20x256xf32> to vector<256xf32>
    %33 = vector.shape_cast %32 : vector<256xf32> to vector<1x256xf32>
    %c0_17 = arith.constant 0 : index
    %34 = memref.load %arg9[%c0_17] : memref<1xf32, #tpu.memory_space<smem>>
    %35 = vector.broadcast %34 : f32 to vector<1x256xf32>
    %36 = arith.addf %33, %35 : vector<1x256xf32>
    %c0_18 = arith.constant 0 : index
    %c0_19 = arith.constant 0 : index
    %37 = vector.load %arg10[%c0_18, %c0_19] : memref<1x256xf32, #tpu.memory_space<vmem>>, vector<1x256xf32>
    tpu.vector_store %arg10[%c0_18, %c0_19], %36 {strides = array<i32>} : memref<1x256xf32, #tpu.memory_space<vmem>>, vector<1x256xf32>,
    return
  }
  func.func @transform_0(%arg0: i32) -> (i32, i32) {
    %c0_i32 = arith.constant 0 : i32
    %c0_i32_0 = arith.constant 0 : i32
    return %c0_i32, %arg0 : i32, i32
  }
  func.func @transform_1(%arg0: i32) -> (i32, i32) {
    %c0_i32 = arith.constant 0 : i32
    %c0_i32_0 = arith.constant 0 : i32
    %c0_i32_1 = arith.constant 0 : i32
    return %c0_i32, %c0_i32_0 : i32, i32
  }
  func.func @transform_2(%arg0: i32) -> (i32, i32) {
    %c0_i32 = arith.constant 0 : i32
    %c0_i32_0 = arith.constant 0 : i32
    %c0_i32_1 = arith.constant 0 : i32
    return %c0_i32, %c0_i32_0 : i32, i32
  }
  func.func @transform_3(%arg0: i32) -> (i32, i32) {
    %c0_i32 = arith.constant 0 : i32
    %c0_i32_0 = arith.constant 0 : i32
    %c0_i32_1 = arith.constant 0 : i32
    return %c0_i32, %c0_i32_0 : i32, i32
  }
  func.func @transform_4(%arg0: i32) -> (i32, i32) {
    %c0_i32 = arith.constant 0 : i32
    %c0_i32_0 = arith.constant 0 : i32
    %c0_i32_1 = arith.constant 0 : i32
    return %c0_i32, %c0_i32_0 : i32, i32
  }
  func.func @transform_5(%arg0: i32) -> (i32, i32) {
    %c0_i32 = arith.constant 0 : i32
    %c0_i32_0 = arith.constant 0 : i32
    %c0_i32_1 = arith.constant 0 : i32
    return %c0_i32, %c0_i32_0 : i32, i32
  }
  func.func @transform_6(%arg0: i32) -> (i32, i32) {
    %c0_i32 = arith.constant 0 : i32
    %c0_i32_0 = arith.constant 0 : i32
    %c0_i32_1 = arith.constant 0 : i32
    return %c0_i32, %c0_i32_0 : i32, i32
  }
  func.func @transform_7(%arg0: i32) -> (i32, i32) {
    %c0_i32 = arith.constant 0 : i32
    %c0_i32_0 = arith.constant 0 : i32
    %c0_i32_1 = arith.constant 0 : i32
    return %c0_i32, %c0_i32_0 : i32, i32
  }
  func.func @transform_8(%arg0: i32) -> i32 {
    %c0_i32 = arith.constant 0 : i32
    %c0_i32_0 = arith.constant 0 : i32
    return %c0_i32 : i32
  }
  func.func @transform_9(%arg0: i32) -> (i32, i32) {
    %c0_i32 = arith.constant 0 : i32
    %c0_i32_0 = arith.constant 0 : i32
    return %c0_i32, %arg0 : i32, i32
  }
}

</mosaic_0001>

<bundles_post_ra>
// kernel: tpu_custom_call.1
= control target key start
LH: loop header
LB: loop body
LE: loop exit
PB: predicated region body
PF: predicated region fallthrough
CT: control target
= control target key end

     0   :  { %s1150_s0 = inlined_call_operand.vmem [shape: f32[2,512], index: 0, kind: input, shape index: {}]   ;;  %s1151_s1 = inlined_call_operand.vmem [shape: f32[20,2], index: 1, kind: input, shape index: {}]   ;;  %s1152_s2 = inlined_call_operand.vmem [shape: f32[20,1], index: 2, kind: input, shape index: {}]   ;;  %s1153_s3 = inlined_call_operand.vmem [shape: f32[20,20], index: 3, kind: input, shape index: {}]   ;;  %s1154_s4 = inlined_call_operand.vmem [shape: f32[20,1], index: 4, kind: input, shape index: {}]   ;;  %s1155_s5 = inlined_call_operand.vmem [shape: f32[20,20], index: 5, kind: input, shape index: {}]   ;;  %s1156_s6 = inlined_call_operand.vmem [shape: f32[20,1], index: 6, kind: input, shape index: {}]   ;;  %s1157_s7 = inlined_call_operand.vmem [shape: f32[20,1], index: 7, kind: input, shape index: {}]   ;;  %s1158_s8 = inlined_call_operand.<no memory space> [shape: f32[1], index: 8, kind: input, shape index: {}]   ;;  %s1159_s9 = inlined_call_operand.hbm [shape: f32[1,512], index: 9, kind: output, shape index: {}]  }
   0x1   :  { %14 = sst [smem:[#allocation2]] %s1158_s8 }
   0x2   :  { %15 = vsyncpa [#allocation4], 0 }
   0x3   :  { %17 = vsyncpa [#allocation4 + $0x1], 0  ;;  %s981_s11 = smov 0   ;;  %s983_s12 = smov 0  }
   0x4   :  { %s985_s13 = smov 0   ;;  %s987_s14 = smov 0  }
   0x5 LB: > { %s748_s8 = sadd.s32 4294967295, %s924_s14   ;;  %s749_s15 = sadd.s32 4294967294, %s924_s14   ;;  %s924_s14 = sphi %s987_s14, %s1165_s14   ;;  %s920_s13 = sphi %s985_s13, %s1164_s13   ;;  %s916_s12 = sphi %s983_s12, %s1163_s12   ;;  %s912_s11 = sphi %s981_s11, %s1162_s11  }
   0x6   : > { %s1004_s16 = sadd.s32 1, %s924_s14   ;;  %s224_s17 = sadd.s32 1, %s920_s13 }
   0x7   : > { %s221_s18 = ssub.s32 %s924_s14, %s1004_s16  ;;  %p234_p0 = scmp.ne.s32.totalorder %s920_s13, %s916_s12 }
   0x8   : > { %p222_p1 = scmp.eq.s32.totalorder %s221_s18, 0  ;;  %p235_p2 = scmp.eq.s32.totalorder %s748_s8, 1 }
   0x9   : > { %p240_p3 = scmp.ne.s32.totalorder %s916_s12, %s912_s11  ;;  %p241_p4 = scmp.eq.s32.totalorder %s749_s15, 1 }
   0xa   : > { %s1016_s19 = scalar_select %p222_p1, %s920_s13, %s224_s17  }
   0xb   : > { %p1018_p5 = por %p235_p2, %p234_p0  ;;  %p1022_p6 = por %p241_p4, %p240_p3 }
   0xc   : > { %p752_p7 = scmp.ge.s32.totalorder %s924_s14, 1  ;;  %p292_p8 = scmp.lt.s32.totalorder %s924_s14, 3 }
   0xe   : > { %p293_p9 = pnand %p752_p7, %p292_p8 }
   0xf   : > { %s1060_s29 = sshll.u32 (!%p293_p9), %s748_s8, 1  ;;  %s325_s15 = sand.u32 (!%p293_p9), 1, %s916_s12  }
  0x10   : > { %296 = sbr.rel (%p293_p9) target bundleno = 508 (0x1fc), region = 56  ;;  %p329_p10 = scmp.lt.s32.totalorder (!%p293_p9), %s1060_s29, 3 }
  0x11   : > { %s753_s17 = sshll.u32 (!%p293_p9), %s325_s15, 1  ;;  %s685_s22 = scalar_lea.hbm (!%p293_p9), %s1159_s9, %s1060_s29 }
  0x12   : > { %s327_s23 = scalar_lea.vmem (!%p293_p9), [#allocation3], %s753_s17  ;;  %s689_s25 = sshll.u32 (!%p293_p9), %s685_s22, 4  ;;  %s690_s25 = int_to_ptr.hbm [resolvable:$true] %s689_s25 }
  0x13   : > { %s687_s24 = sshll.u32 (!%p293_p9), %s327_s23, 4  ;;  %s675_s26 = scalar_lea.sflag (!%p293_p9), [#allocation4], %s325_s15  ;;  %s688_s24 = int_to_ptr.vmem [resolvable:$true] %s687_s24 }
  0x14   : > { %s876_s27 = sshra.s32 (!%p293_p9), %s690_s25, 4  ;;  %s877_s27 = int_to_ptr.hbm [resolvable:$true] %s876_s27 }
  0x15   : > { %v341_v0 = vld [vmem:[%s1152_s2 + $0x10] sm:$0xf]  ;;  %v926_v2 = vmov 0   ;;  %v336_v3 = vld [vmem:[%s1151_s1] sm:$0xff]  ;;  %v337_v4 = vld [vmem:[%s1151_s1 + $0x8] sm:$0xff]  ;;  %v927_v6 = vmov 1   ;;  %p883_p0 = scmp.lt.s32.totalorder %s877_s27, %s1159_s9 }
  0x16   : > { %v338_v1 = vld [vmem:[%s1151_s1 + $0x10] sm:$0xf]  ;;  %818 = vset.pattern.permute.xlu1 %v926_v2  ;;  %817 = vset.pattern.permute.xlu0 %v926_v2  ;;  %v340_v5 = vld [vmem:[%s1152_s2 + $0x8] sm:$0xff]  ;;  %v339_v7 = vld [vmem:[%s1152_s2] sm:$0xff]  ;;  %s330_s30 = scalar_select %p329_p10, %s1060_s29, 3  ;;  %vm458_vm0 = vcmask 1043456  }
  0x17   : > { %382 = vperm.xlu1 %818, %v341_v0   ;;  %354 = vperm.xlu0 %817, %v338_v1   ;;  %v432_v8 = vld [vmem:[%s1154_s4 + $0x10] sm:$0xf]  ;;  %v526_v9 = vld [vmem:[%s1156_s6] sm:$0xff]  ;;  %v618_v49 = vld [vmem:[%s1157_s7 + $0x8] sm:$0xff]  ;;  %vm448_vm1 = vcmask 162816   ;;  %vm666_vm2 = vcmask 1040384  }
  0x18   : > { %820 = vset.pattern.permute.xlu2 %v926_v2  ;;  %v528_v10 = vld [vmem:[%s1156_s6 + $0x10] sm:$0xf]  ;;  %s755_s10 = sshll.u32 %s330_s30, 1  ;;  %v430_v33 = vld [vmem:[%s1154_s4] sm:$0xff]  ;;  %v431_v50 = vld [vmem:[%s1154_s4 + $0x8] sm:$0xff]  ;;  %s878_s29 = scalar_lea.hbm %s877_s27, 2 }
  0x19   : > { %344 = vperm.xlu2 %820, %v336_v3   ;;  %v619_v11 = vld [vmem:[%s1157_s7 + $0x10] sm:$0xf]  ;;  %s332_s18 = scalar_lea.vmem %s1150_s0, %s755_s10  ;;  %v527_v59 = vld [vmem:[%s1156_s6 + $0x8] sm:$0xff]  ;;  %v427_v62 = vld [vmem:[%s1153_s3] sm:$0xff]  ;;  %s659_s10 = sld [smem:[#allocation2]] }
  0x1a   : > { %v335_v12 = vld [vmem:[%s332_s18] sm:$0xf]  ;;  %p879_p11 = scmp.ne.s32.totalorder %s877_s27, %s878_s29 }
  0x1b   : > { %v358_v14 = vperm.slane %v335_v12, 0  ;;  %v359_v15 = vperm.slane %v335_v12, 2  ;;  %v403_v20 = vperm.slane %v335_v12, 1  ;;  %v404_v21 = vperm.slane %v335_v12, 3 }
  0x1c   : > { %p880_p12 = pnand %p879_p11, %p1018_p5 }
  0x1d   : > { %v362_v18 = vperm.slane %v358_v14, 0  ;;  %v363_v19 = vperm.slane %v359_v15, 0  ;;  %v407_v25 = vperm.slane %v403_v20, 1  ;;  %v408_v26 = vperm.slane %v404_v21, 1 }
  0x1e   : > { %p881_p13 = pneg %p880_p12 }
  0x1f   : > { %819 = vset.pattern.permute.xlu1 %v927_v6  ;;  %349 = vperm.xlu0 %817, %v337_v4  }
  0x20   : > { %400 = vperm.xlu1 %819, %v338_v1   ;;  %v617_v1 = vld [vmem:[%s1157_s7] sm:$0xff] }
  0x21   : > { %377 = vperm.xlu2 %820, %v340_v5  }
  0x27   : > { %821 = vset.pattern.permute.xlu0 %v927_v6 }
  0x28   : > { %822 = vset.pattern.permute.xlu1 %v926_v2  ;;  %396 = vperm.xlu0 %821, %v337_v4  }
  0x29   : > { %372 = vperm.xlu1 %822, %v339_v7   ;;  %823 = vset.pattern.permute.xlu2 %v927_v6 }
  0x2a   : > { %392 = vperm.xlu2 %823, %v336_v3   ;;  %v429_v3 = vld [vmem:[%s1153_s3 + $0x10] sm:$0xf] }
  0x30   : > { %825 = vset.pattern.permute.xlu0 %v926_v2 }
  0x31   : > { %445 = vperm.xlu1 %822, %v432_v8   ;;  %435 = vperm.xlu0 %825, %v430_v33  }
  0x32   : > { %824 = vset.pattern.permute.xlu2 %v926_v2  ;;  %v428_v2 = vld [vmem:[%s1153_s3 + $0x8] sm:$0xff] }
  0x33   : > { %440 = vperm.xlu2 %824, %v431_v50  }
  0x39   : > { %531 = vperm.xlu1 %822, %v526_v9   ;;  %627 = vperm.xlu0 %825, %v618_v49  }
  0x3b   : > { %536 = vperm.xlu2 %824, %v527_v59  }
  0x41   : > { %541 = vperm.xlu1 %822, %v528_v10  }
  0x43   : > { %622 = vperm.xlu2 %824, %v617_v1  }
  0x49   : > { %632 = vperm.xlu1 %822, %v619_v11  }
  0x73   : > { %v345_v13 = vpop.permute.xlu2 %344 }
  0x74   : > { %v364_v39 = vmul.f32 %v362_v18, %v345_v13  ;;  %v365_v40 = vmul.f32 %v363_v19, %v345_v13 }
  0x7b   : > { %v378_v24 = vpop.permute.xlu2 %377 }
  0x84   : > { %v393_v38 = vpop.permute.xlu2 %392 }
  0x85   : > { %v409_v42 = vmul.f32 %v407_v25, %v393_v38  ;;  %v410_v43 = vmul.f32 %v408_v26, %v393_v38 }
  0x89   : > { %v355_v16 = vpop.permute.xlu0 %354  ;;  %v383_v17 = vpop.permute.xlu1 %382 }
  0x8a   : > { %v368_v22 = vmul.f32 %v362_v18, %v355_v16  ;;  %v369_v23 = vmul.f32 %v363_v19, %v355_v16 }
  0x8c   : > { %v389_v29 = vadd.f32 %v383_v17, %v368_v22  ;;  %v390_v30 = vadd.f32 %v383_v17, %v369_v23  ;;  %v523_v23 = vld [vmem:[%s1155_s5] sm:$0xff] }
  0x8d   : > { %v441_v9 = vpop.permute.xlu2 %440 }
  0x91   : > { %v350_v27 = vpop.permute.xlu0 %349 }
  0x92   : > { %v401_v28 = vpop.permute.xlu1 %400  ;;  %v366_v36 = vmul.f32 %v362_v18, %v350_v27  ;;  %v367_v37 = vmul.f32 %v363_v19, %v350_v27  ;;  %v525_v27 = vld [vmem:[%s1155_s5 + $0x10] sm:$0xf] }
  0x93   : > { %v413_v31 = vmul.f32 %v407_v25, %v401_v28  ;;  %v414_v32 = vmul.f32 %v408_v26, %v401_v28 }
  0x94   : > { %v387_v44 = vadd.f32 %v378_v24, %v366_v36  ;;  %v388_v45 = vadd.f32 %v378_v24, %v367_v37 }
  0x95   : > { %v419_v34 = vadd.f32 %v413_v31, %v389_v29  ;;  %v420_v35 = vadd.f32 %v414_v32, %v390_v30  ;;  %v537_v32 = vpop.permute.xlu2 %536 }
  0x97   : > { %826 = vtanh.f32 %v419_v34 }
  0x98   : > { %828 = vtanh.f32 %v420_v35 }
  0x9a   : > { %v397_v41 = vpop.permute.xlu0 %396 }
  0x9b   : > { %v411_v46 = vmul.f32 %v407_v25, %v397_v41  ;;  %v412_v47 = vmul.f32 %v408_v26, %v397_v41  ;;  %v373_v48 = vpop.permute.xlu1 %372  ;;  %v524_v26 = vld [vmem:[%s1155_s5 + $0x8] sm:$0xff] }
  0x9c   : > { %v385_v51 = vadd.f32 %v373_v48, %v364_v39  ;;  %v386_v52 = vadd.f32 %v373_v48, %v365_v40 }
  0x9d   : > { %v827_v53 = vpop.eup %826  ;;  %v417_v54 = vadd.f32 %v411_v46, %v387_v44  ;;  %v418_v55 = vadd.f32 %v412_v47, %v388_v45  ;;  %v623_v49 = vpop.permute.xlu2 %622 }
  0x9e   : > { %v829_v56 = vpop.eup %828  ;;  %v415_v57 = vadd.f32 %v409_v42, %v385_v51  ;;  %v416_v58 = vadd.f32 %v410_v43, %v386_v52  ;;  %756 = vmatpush.msk.msra.mxu0 %vm458_vm0, %v827_v53 }
  0x9f   : > { %830 = vtanh.f32 %v417_v54  ;;  %760 = vmatpush.msk.msra.mxu1 %vm458_vm0, %v829_v56 }
  0xa0   : > { %832 = vtanh.f32 %v418_v55 }
  0xa1   : > { %834 = vtanh.f32 %v415_v57 }
  0xa2   : > { %836 = vtanh.f32 %v416_v58 }
  0xa3   : > { %v446_v8 = vpop.permute.xlu1 %445  ;;  %v436_v11 = vpop.permute.xlu0 %435 }
  0xa5   : > { %v831_v60 = vpop.eup %830 }
  0xa6   : > { %v833_v61 = vpop.eup %832  ;;  %479 = vmatpush.msra.mxu0 %v831_v60 }
  0xa7   : > { %v835_v63 = vpop.eup %834  ;;  %505 = vmatpush.msra.mxu1 %v833_v61 }
  0xa8   : > { %v837_v0 = vpop.eup %836  ;;  %480 = vmatpush.msra.mxu0 %v835_v63 }
  0xa9   : > { %506 = vmatpush.msra.mxu1 %v837_v0  ;;  %757 = vmatmul.msk.f32.vlgmr.msra.gmra.mxu0 %vm448_vm1, %v427_v62 }
  0xaa   : > { %761 = vmatmul.msk.f32.vlgmr.msra.gmra.mxu1 %vm448_vm1, %v427_v62 }
  0xab   : > { %v532_v30 = vpop.permute.xlu1 %531  ;;  %v628_v46 = vpop.permute.xlu0 %627 }
  0xb1   : > { %758 = vmatmul.msk.f32.gmra.mxu0 %vm448_vm1, %v428_v2 }
  0xb2   : > { %762 = vmatmul.msk.f32.gmra.mxu1 %vm448_vm1, %v428_v2 }
  0xb3   : > { %v542_v38 = vpop.permute.xlu1 %541 }
  0xb9   : > { %759 = vmatmul.msk.f32.gmra.mxu0 %vm448_vm1, %v429_v3 }
  0xba   : > { %763 = vmatmul.msk.f32.gmra.mxu1 %vm448_vm1, %v429_v3 }
  0xbb   : > { %v633_v52 = vpop.permute.xlu1 %632 }
 0x126   : > { %v482_v4 = vpop.f32.mrf.mxu0 }
 0x127   : > { %v508_v5 = vpop.f32.mrf.mxu1  ;;  %v483_v17 = vadd.f32 %v482_v4, %v436_v11 }
 0x128   : > { %v509_v18 = vadd.f32 %v508_v5, %v436_v11 }
 0x12e   : > { %v485_v6 = vpop.f32.mrf.mxu0 }
 0x12f   : > { %v511_v7 = vpop.f32.mrf.mxu1  ;;  %v486_v12 = vadd.f32 %v485_v6, %v441_v9 }
 0x130   : > { %v512_v15 = vadd.f32 %v511_v7, %v441_v9 }
 0x136   : > { %v488_v10 = vpop.f32.mrf.mxu0 }
 0x137   : > { %v489_v13 = vadd.f32 %v488_v10, %v446_v8  ;;  %v514_v14 = vpop.f32.mrf.mxu1  ;;  %v660_v10 = vstv %s659_s10  ;;  %s882_s10 = scalar_lea.hbm %s1159_s9, 4 }
 0x138   : > { %v515_v16 = vadd.f32 %v514_v14, %v446_v8  ;;  %p884_p1 = scmp.lt.s32.totalorder %s882_s10, %s878_s29 }
 0x139   : > { %838 = vtanh.f32 %v489_v13  ;;  %v669_v13 = vlaneseq }
 0x13a   : > { %840 = vtanh.f32 %v515_v16  ;;  %p885_p2 = por %p884_p1, %p883_p0 }
 0x13b   : > { %842 = vtanh.f32 %v486_v12  ;;  %vm671_vm3 = vcmp.lt.s32.totalorder %v669_v13, 256 }
 0x13c   : > { %844 = vtanh.f32 %v512_v15  ;;  %p886_p3 = pnand %p885_p2, %p881_p13 }
 0x13d   : > { %846 = vtanh.f32 %v483_v17 }
 0x13e   : > { %848 = vtanh.f32 %v509_v18 }
 0x13f   : > { %v839_v19 = vpop.eup %838 }
 0x140   : > { %v841_v20 = vpop.eup %840  ;;  %764 = vmatpush.msk.msra.mxu2 %vm458_vm0, %v839_v19 }
 0x141   : > { %v843_v21 = vpop.eup %842  ;;  %768 = vmatpush.msk.msra.mxu3 %vm458_vm0, %v841_v20 }
 0x142   : > { %v845_v22 = vpop.eup %844  ;;  %573 = vmatpush.msra.mxu2 %v843_v21 }
 0x143   : > { %v847_v24 = vpop.eup %846  ;;  %599 = vmatpush.msra.mxu3 %v845_v22 }
 0x144   : > { %v849_v25 = vpop.eup %848  ;;  %574 = vmatpush.msra.mxu2 %v847_v24 }
 0x145   : > { %600 = vmatpush.msra.mxu3 %v849_v25  ;;  %765 = vmatmul.msk.f32.vlgmr.msra.gmra.mxu2 %vm448_vm1, %v523_v23 }
 0x146   : > { %769 = vmatmul.msk.f32.vlgmr.msra.gmra.mxu3 %vm448_vm1, %v523_v23 }
 0x14d   : > { %766 = vmatmul.msk.f32.gmra.mxu2 %vm448_vm1, %v524_v26 }
 0x14e   : > { %770 = vmatmul.msk.f32.gmra.mxu3 %vm448_vm1, %v524_v26 }
 0x155   : > { %767 = vmatmul.msk.f32.gmra.mxu2 %vm448_vm1, %v525_v27 }
 0x156   : > { %771 = vmatmul.msk.f32.gmra.mxu3 %vm448_vm1, %v525_v27 }
 0x1c8   : > { %v576_v28 = vpop.f32.mrf.mxu2 }
 0x1c9   : > { %v602_v29 = vpop.f32.mrf.mxu3  ;;  %v577_v36 = vadd.f32 %v576_v28, %v532_v30 }
 0x1ca   : > { %v603_v37 = vadd.f32 %v602_v29, %v532_v30 }
 0x1d0   : > { %v579_v31 = vpop.f32.mrf.mxu2 }
 0x1d1   : > { %v605_v33 = vpop.f32.mrf.mxu3  ;;  %v580_v34 = vadd.f32 %v579_v31, %v537_v32 }
 0x1d2   : > { %v606_v35 = vadd.f32 %v605_v33, %v537_v32 }
 0x1d3   : > { %850 = vtanh.f32 %v580_v34 }
 0x1d4   : > { %852 = vtanh.f32 %v606_v35 }
 0x1d5   : > { %854 = vtanh.f32 %v577_v36 }
 0x1d6   : > { %856 = vtanh.f32 %v603_v37 }
 0x1d8   : > { %v582_v39 = vpop.f32.mrf.mxu2 }
 0x1d9   : > { %v583_v40 = vadd.f32 %v582_v39, %v542_v38  ;;  %v608_v41 = vpop.f32.mrf.mxu3  ;;  %v851_v43 = vpop.eup %850 }
 0x1da   : > { %v609_v42 = vadd.f32 %v608_v41, %v542_v38  ;;  %v853_v44 = vpop.eup %852  ;;  %v637_v48 = vmul.f32 %v851_v43, %v628_v46 }
 0x1db   : > { %858 = vtanh.f32 %v583_v40  ;;  %v855_v45 = vpop.eup %854  ;;  %v638_v50 = vmul.f32 %v853_v44, %v628_v46 }
 0x1dc   : > { %860 = vtanh.f32 %v609_v42  ;;  %v857_v47 = vpop.eup %856  ;;  %v635_v53 = vmul.f32 %v855_v45, %v623_v49 }
 0x1dd   : > { %v636_v55 = vmul.f32 %v857_v47, %v623_v49 }
 0x1de   : > { %v641_v57 = vadd.f32 %v637_v48, %v635_v53 }
 0x1df   : > { %v650_v59 = vadd.f32 %v638_v50, %v636_v55 }
 0x1e1   : > { %v859_v51 = vpop.eup %858 }
 0x1e2   : > { %v861_v54 = vpop.eup %860  ;;  %v639_v56 = vmul.f32 %v859_v51, %v633_v52 }
 0x1e3   : > { %v640_v58 = vmul.f32 %v861_v54, %v633_v52 }
 0x1e4   : > { %v642_v60 = vsel %vm458_vm0, %v639_v56, 0.0 }
 0x1e5   : > { %v643_v61 = vadd.f32 %v642_v60, %v641_v57  ;;  %v651_v62 = vsel %vm458_vm0, %v640_v58, 0.0 }
 0x1e6   : > { %v652_v63 = vadd.f32 %v651_v62, %v650_v59 }
 0x1e7   : > { %v644_v0 = vrot.slane %v643_v61, 4 }
 0x1e8   : > { %v653_v1 = vrot.slane %v652_v63, 4 }
 0x1e9   : > { %v645_v2 = vadd.f32 %v644_v0, %v643_v61 }
 0x1ea   : > { %v654_v3 = vadd.f32 %v653_v1, %v652_v63 }
 0x1eb   : > { %v646_v4 = vrot.slane %v645_v2, 2 }
 0x1ec   : > { %v655_v5 = vrot.slane %v654_v3, 2 }
 0x1ed   : > { %v647_v6 = vadd.f32 %v646_v4, %v645_v2 }
 0x1ee   : > { %v656_v7 = vadd.f32 %v655_v5, %v654_v3 }
 0x1ef   : > { %v648_v8 = vrot.slane %v647_v6, 1 }
 0x1f0   : > { %v657_v9 = vrot.slane %v656_v7, 1 }
 0x1f1   : > { %v649_v11 = vadd.f32 %v648_v8, %v647_v6 }
 0x1f2   : > { %v658_v12 = vadd.f32 %v657_v9, %v656_v7 }
 0x1f3   : > { %v661_v15 = vadd.f32 %v660_v10, %v649_v11 }
 0x1f4   : > { %v662_v14 = vadd.f32 %v660_v10, %v658_v12 }
 0x1f6   : > { %v665_v16 = vrot.slane %v662_v14, 7 }
 0x1f8   : > { %v667_v17 = vsel %vm666_vm2, %v661_v15, %v665_v16 }
 0x1f9   : > { %673 = vst.msk [vmem:[%s327_s23] sm:$0x3] %vm671_vm3, %v667_v17 }
 0x1fa   : > { %889 = shalt.err (!%p886_p3)
}
 0x1fb   : > { %776 = dma.vmem_to_hbm [thread:$0]  (%p1018_p5), %s688_s24, 32, %s690_s25, %s675_s26  }
 0x1fc PF: > { %p782_p4 = scmp.ge.s32.totalorder %s924_s14, 2  ;;  %s701_s15 = sand.u32 1, %s912_s11  }
 0x1fd   : > { %s702_s8 = scalar_lea.sflag [#allocation4], %s701_s15 }
 0x1fe   : > { %p779_p7 = pnand %p782_p4, %p1022_p6 }
 0x200   : > { %p780_p8 = pneg %p779_p7 }
 0x202   : > { %907 = dma.done.wait (%p780_p8), %s702_s8, 32  }
 0x203   : > { %909 = vsyncadd (%p780_p8), %s702_s8, 4294967264  ;;  %p20_p9 = scmp.ge.s32.totalorder %s1004_s16, 4   ;;  %s1162_s11 = smov %s916_s12 }
 0x204   : > { %s1163_s12 = smov %s920_s13  ;;  %s1164_s13 = smov %s1016_s19 }
 0x205   : > { %s1165_s14 = smov %s1004_s16  ;;  %22 = sbr.rel (!%p20_p9) target bundleno = 5 (0x5), region = 91 }
 0x20a   :  { %708 = vsyncpa [#allocation4], 1 }
 0x20b   :  { %710 = vsyncpa [#allocation4 + $0x1], 1 }

</bundles_post_ra>
